<compile_context>
chip_gen: v5e
topology: v5e:2x2
jax: 0.10.0
libtpu: 0.0.40
codegen_flags: <defaults>
</compile_context>

<pallas_src>
import jax
import jax.numpy as jnp
from jax.experimental import pallas as pl
from jax.experimental.pallas import tpu as pltpu

# ---------------- static config (mirrors WavenetDecoderConfig) ----------------
B           = 2
T           = 128        # frames per sequence (power of two -> cheap lane%T)
CONTENT_DIM = 8
PITCH_DIM   = 8          # frame_wise_pitch=True -> emb_f0 is a 1x1 Conv1d
HIDDEN      = 16         # cfg.hidden_dim == cfg.in_dim
OUT_DIM     = 8          # cfg.out_dim
GIN         = 16         # cfg.gin_channels
KSIZE       = 3          # cfg.kernel_size (odd)
DIL_RATE    = 2          # cfg.dilation_rate
N_LAYERS    = 3          # cfg.n_layers

BT  = B * T
L2H = 2 * HIDDEN
NZ  = N_LAYERS * L2H                                  # 96 hoisted z-bias rows

# packed-matrix / packed-bias row offsets (last layer's rs block trimmed to H):
#   [pre (H) | rs_0 (2H) | rs_1 (2H) | rs_{L-1} (H) | proj (OUT)]
M_RS     = HIDDEN
M_PROJ   = HIDDEN + (N_LAYERS - 1) * L2H + HIDDEN     # 96
MAT_ROWS = M_PROJ + OUT_DIM                           # 104

# aux rows (per decoder, all f32, pre-broadcast over the B*T lane axis):
#   [mask (1) | pad (7) | gamma (H) | beta (H) | z-bias layer 0..L-1 (L*2H)]
R_MASK, R_G, R_B, R_Z = 0, 8, 8 + HIDDEN, 8 + 2 * HIDDEN
AUX_ROWS = R_Z + NZ                                   # 136

assert CONTENT_DIM == PITCH_DIM, "stacked emb inputs assume equal content/pitch dims"
assert T & (T - 1) == 0, "lane%T uses a bitmask; T must be a power of two"
assert HIDDEN % 16 == 0, "packed bf16 weight slices must stay sublane aligned"
# dilated-conv edge masks assume the padding never spans a whole sequence after
# the B*T fold (otherwise a tap could read the neighboring sequence's lanes).
assert (KSIZE - 1) * DIL_RATE ** (N_LAYERS - 1) // 2 < T


def _mish(x):  # numerically-stable Mish (plain XLA, used for the hoisted FiLM)
    return x * jnp.tanh(jax.nn.softplus(x))


# ------------------------ pltpu.roll convention probe --------------------------
def _probe_roll_matches_jnp() -> bool:
    """pltpu.roll is expected to match jnp.roll (out[i] = in[i - shift]).
    Probe once on the real backend so the dilated-conv tap shifts stay correct
    even if the rotate convention differs across jax/Mosaic versions."""
    def _k(x_ref, o_ref):
        o_ref[...] = pltpu.roll(x_ref[...], 1, axis=1)
    x = jnp.broadcast_to(jnp.arange(BT, dtype=jnp.float32), (8, BT))
    out = pl.pallas_call(_k, out_shape=jax.ShapeDtypeStruct((8, BT), jnp.float32))(x)
    return bool(out[0, 0] > float(T))   # jnp.roll convention -> BT-1 ; flipped -> 1


# ------------------------ chip-generation placement choice ---------------------
def _prefer_decoder_split() -> bool:
    """Split decoders across grid steps only on chips with 2 TensorCores per
    chip (v7x).  On single-TC chips (v5e/v6e) a 2-step grid is just serialized
    overhead, so both decoders run interleaved in one program instead."""
    try:
        kind = jax.devices()[0].device_kind.lower()
    except Exception:
        return False
    return ("v7" in kind) or ("7x" in kind) or ("ironwood" in kind)


# --------------------------- parameter packing ----------------------------------
def pack_params(params):
    """Pack/cast the PyTorch-layout params once (outside the hot path)."""
    pr = params["prep"]

    def pack_dec(w):
        # res/skip: last layer only needs its first H rows -> trim.
        rs_w = jnp.concatenate(
            [w["rs_w"][:N_LAYERS - 1].reshape((N_LAYERS - 1) * L2H, HIDDEN),
             w["rs_w"][N_LAYERS - 1, :HIDDEN]], axis=0)
        mat = jnp.concatenate([w["pre_w"], rs_w, w["proj_w"]], axis=0)       # (104, H)
        # dilated conv weights: (L, K, 2H, H) -> (L, 2H, K*H), tap-major on cols
        in_w = jnp.transpose(w["in_w"], (0, 2, 1, 3)).reshape(N_LAYERS, L2H, KSIZE * HIDDEN)
        rs_b = jnp.concatenate(
            [w["rs_b"][:N_LAYERS - 1].reshape((N_LAYERS - 1) * L2H, 1),
             w["rs_b"][N_LAYERS - 1, :HIDDEN]], axis=0)
        sbias = jnp.concatenate([w["pre_b"], rs_b, w["proj_b"]], axis=0)     # (104, 1)
        # static part of the hoisted z-bias: in_b + cond_b (cond_w @ g added in XLA)
        zb_static = (w["in_b"] + w["cond_b"].reshape(N_LAYERS, L2H, 1)).reshape(NZ)
        return mat, in_w, sbias, w["cond_w"], zb_static

    mats, inws, sbs, cws, zbs = zip(*(pack_dec(params[k]) for k in ("dec_ftr", "dec_src")))
    return dict(
        emb_w=jnp.stack([pr["emb_c_w"], pr["emb_f0_w"]]).astype(jnp.bfloat16),  # (2,H,8)
        emb_b=jnp.stack([pr["emb_c_b"], pr["emb_f0_b"]]),                        # (2,H,1)
        film_w1=pr["film_w1"], film_b1=pr["film_b1"],        # FiLM stays in XLA (f32)
        film_w2=pr["film_w2"], film_b2=pr["film_b2"],
        mat_w=jnp.stack(mats).astype(jnp.bfloat16),          # (2, 104, 16)
        in_w=jnp.stack(inws).astype(jnp.bfloat16),           # (2, 3, 32, 48)
        sbias=jnp.stack(sbs),                                # (2, 104, 1) f32
        cond_w=jnp.stack(cws),                               # (2, 96, 16) f32 (XLA only)
        zb_static=jnp.stack(zbs),                            # (2, 96)     f32 (XLA only)
    )


# ------------------------------ fused kernel ------------------------------------
def make_forward(roll_matches_jnp: bool, split_decoders: bool):
    H = HIDDEN
    ndp = 1 if split_decoders else 2          # decoders handled per grid step
    nsteps = 2 // ndp

    def kernel(inp_ref, aux_ref, emb_w_ref, emb_b_ref, mat_ref, in_w_ref,
               sbias_ref, y_ref):
        # lane position inside its own length-T sequence (for conv edge masks)
        t_seq = jax.lax.broadcasted_iota(jnp.int32, (1, BT), 1) & (T - 1)

        def shifted_tap(xb, off):
            """result[:, l] = x[:, l + off] if l+off stays inside the lane's own
            length-T segment (per-sequence zero padding of the conv), else 0."""
            shift = ((-off) if roll_matches_jnp else off) % BT
            rolled = pltpu.roll(xb, shift, axis=1)
            valid = (t_seq >= -off) if off < 0 else (t_seq < T - off)
            return jnp.where(valid, rolled, jnp.zeros_like(rolled))

        for d in range(ndp):                  # static unroll; chains are independent
            gid = d if ndp == 2 else pl.program_id(0)   # global decoder id
            m = aux_ref[d, R_MASK:R_MASK + 1, :]        # (1, BT) f32

            # ---- prep: per-decoder 1x1 embedding conv
            emb = (jnp.dot(emb_w_ref[d], inp_ref[d],
                           preferred_element_type=jnp.float32) + emb_b_ref[d])  # (H,BT)

            # dec 0: F.relu(emb_c(content));  dec 1: gamma*emb_f0(pitch)+beta (FiLM)
            if isinstance(gid, int):          # merged mode: static branch
                x0 = (jnp.maximum(emb, 0.0) if gid == 0 else
                      aux_ref[d, R_G:R_G + H] * emb + aux_ref[d, R_B:R_B + H])
            else:                             # split mode: cheap VPU select
                x0 = jnp.where(gid == 0,
                               jnp.maximum(emb, 0.0),
                               aux_ref[d, R_G:R_G + H] * emb + aux_ref[d, R_B:R_B + H])

            # ---- Decoder.pre (1x1 conv): x = pre(x*mask)*mask
            x = (jnp.dot(mat_ref[d, 0:H], (x0 * m).astype(jnp.bfloat16),
                         preferred_element_type=jnp.float32)
                 + sbias_ref[d, 0:H]) * m                                       # (H,BT)

            # ---- WaveNet layers (cond matmul hoisted to XLA -> z-bias in aux)
            out = jnp.zeros((H, BT), jnp.float32)
            for i in range(N_LAYERS):
                dil = DIL_RATE ** i
                pad = (KSIZE - 1) * dil // 2
                xb = x.astype(jnp.bfloat16)                                     # bf16 taps
                taps = []
                for j in range(KSIZE):
                    off = j * dil - pad
                    taps.append(xb if off == 0 else shifted_tap(xb, off))
                xcat = jnp.concatenate(taps, axis=0)                            # (K*H,BT)

                z = (jnp.dot(in_w_ref[d, i], xcat, preferred_element_type=jnp.float32)
                     + aux_ref[d, R_Z + i * L2H:R_Z + (i + 1) * L2H])           # + zbias
                acts = (jnp.tanh(z[:H]) * jax.nn.sigmoid(z[H:])).astype(jnp.bfloat16)

                if i < N_LAYERS - 1:
                    rs = (jnp.dot(mat_ref[d, M_RS + i * L2H:M_RS + (i + 1) * L2H], acts,
                                  preferred_element_type=jnp.float32)
                          + sbias_ref[d, M_RS + i * L2H:M_RS + (i + 1) * L2H])
                    x = (x + rs[:H]) * m
                    out = out + rs[H:]
                else:                                    # trimmed (H, H) res/skip
                    rs = (jnp.dot(mat_ref[d, M_RS + i * L2H:M_RS + i * L2H + H], acts,
                                  preferred_element_type=jnp.float32)
                          + sbias_ref[d, M_RS + i * L2H:M_RS + i * L2H + H])
                    out = out + rs

            # ---- Decoder.proj (1x1 conv) * mask
            outb = (out * m).astype(jnp.bfloat16)
            y_ref[d] = (jnp.dot(mat_ref[d, M_PROJ:M_PROJ + OUT_DIM], outb,
                                preferred_element_type=jnp.float32)
                        + sbias_ref[d, M_PROJ:M_PROJ + OUT_DIM]) * m

    # ------------------------- pallas_call wrapper -------------------------------
    def _dspec(shape):   # decoder-stacked arrays (leading dim 2, grid/block indexed)
        n = len(shape)
        return pl.BlockSpec((ndp,) + tuple(shape), lambda s, n=n: (s,) + (0,) * n)

    pallas_fn = pl.pallas_call(
        kernel,
        out_shape=jax.ShapeDtypeStruct((2, OUT_DIM, BT), jnp.float32),
        grid=(nsteps,),
        in_specs=[
            _dspec((CONTENT_DIM, BT)),                 # content / pitch        (bf16)
            _dspec((AUX_ROWS, BT)),                    # mask|gamma|beta|zbias  (f32)
            _dspec((HIDDEN, CONTENT_DIM)),             # emb weights            (bf16)
            _dspec((HIDDEN, 1)),                       # emb biases             (f32)
            _dspec((MAT_ROWS, HIDDEN)),                # packed pre/res-skip/proj (bf16)
            _dspec((N_LAYERS, L2H, KSIZE * HIDDEN)),   # dilated conv weights   (bf16)
            _dspec((MAT_ROWS, 1)),                     # packed static biases   (f32)
        ],
        out_specs=_dspec((OUT_DIM, BT)),
        compiler_params=pltpu.CompilerParams(dimension_semantics=("parallel",)),
    )

    @jax.jit
    def forward(emb_content, emb_pitch, g, mask, packed):
        def fold(a):                         # (B, C, T) -> (C, B*T), batch on lanes
            return jnp.transpose(a, (1, 0, 2)).reshape(a.shape[1], BT)

        inp = jnp.stack([fold(emb_content), fold(emb_pitch)]).astype(jnp.bfloat16)

        # ---- hoisted, frame-independent math (plain XLA, f32) ----
        gsq = g[:, :, 0]                                                       # (B, GIN)
        h1 = _mish(gsq @ packed["film_w1"].T + packed["film_b1"][:, 0])
        fo = h1 @ packed["film_w2"].T + packed["film_b2"][:, 0]                # (B, 2H)
        film_bt = fold(jnp.broadcast_to(fo[:, :, None], (B, L2H, T)))          # (2H, BT)

        # per-layer z-bias = cond_w @ g + in_b + cond_b, broadcast over frames
        zb = (jnp.einsum('dog,bg->dbo', packed["cond_w"], gsq)
              + packed["zb_static"][:, None, :])                               # (2,B,NZ)
        zb_bt = jnp.transpose(jnp.broadcast_to(zb[:, :, :, None], (2, B, NZ, T)),
                              (0, 2, 1, 3)).reshape(2, NZ, BT)                 # (2,NZ,BT)

        head = jnp.concatenate(
            [fold(mask), jnp.zeros((R_G - 1, BT), jnp.float32), film_bt], axis=0)
        aux = jnp.concatenate(
            [jnp.broadcast_to(head[None], (2, R_Z, BT)), zb_bt], axis=1)       # (2,136,BT)

        y = pallas_fn(inp, aux, packed["emb_w"], packed["emb_b"],
                      packed["mat_w"], packed["in_w"], packed["sbias"])
        y = y.reshape(2, OUT_DIM, B, T).transpose(0, 2, 1, 3)                  # (2,B,O,T)
        return y[1], y[0]                                                      # (src, ftr)

    return forward


# ------------------------------ pure-JAX reference -----------------------------
def _prep_ref(emb_content, emb_pitch, g, p):
    content = jnp.einsum('oc,bct->bot', p["emb_c_w"], emb_content) + p["emb_c_b"][None]
    pitch = jnp.einsum('oc,bct->bot', p["emb_f0_w"], emb_pitch) + p["emb_f0_b"][None]
    h1 = _mish(jnp.einsum('og,bgk->bok', p["film_w1"], g) + p["film_b1"][None])
    fo = jnp.einsum('oh,bhk->bok', p["film_w2"], h1) + p["film_b2"][None]
    gamma, beta = fo[:, :HIDDEN], fo[:, HIDDEN:]
    return jnp.maximum(content, 0.0), gamma * pitch + beta


def _decoder_ref(x, mask, g, w):
    H = HIDDEN
    h = jnp.einsum('oc,bct->bot', w["pre_w"], x * mask) + w["pre_b"][None]
    h = h * mask
    gc = jnp.einsum('og,bgk->bok', w["cond_w"], g) + w["cond_b"][None]
    out = jnp.zeros_like(h)
    for i in range(N_LAYERS):
        d = DIL_RATE ** i
        pad = (KSIZE - 1) * d // 2
        hp = jnp.pad(h, ((0, 0), (0, 0), (pad, pad)))
        xin = jnp.zeros((h.shape[0], 2 * H, T), jnp.float32)
        for j in range(KSIZE):
            xin = xin + jnp.einsum('oc,bct->bot', w["in_w"][i, j], hp[:, :, j * d:j * d + T])
        xin = xin + w["in_b"][i][None]
        z = xin + gc[:, i * 2 * H:(i + 1) * 2 * H]
        acts = jnp.tanh(z[:, :H]) * jax.nn.sigmoid(z[:, H:])
        rs = jnp.einsum('oc,bct->bot', w["rs_w"][i], acts) + w["rs_b"][i][None]
        if i < N_LAYERS - 1:
            h = (h + rs[:, :H]) * mask
            out = out + rs[:, H:]
        else:
            out = out + rs[:, :H]
    out = out * mask
    return (jnp.einsum('oc,bct->bot', w["proj_w"], out) + w["proj_b"][None]) * mask


def _reference_forward(emb_content, emb_pitch, g, mask, params):
    content_relu, pitch = _prep_ref(emb_content, emb_pitch, g, params["prep"])
    y_ftr = _decoder_ref(content_relu, mask, g, params["dec_ftr"])
    y_src = _decoder_ref(pitch, mask, g, params["dec_src"])
    return y_src, y_ftr


# ------------------------------ deterministic params ---------------------------
def _init(key, shape, scale=0.2):
    return scale * jax.random.normal(key, shape, jnp.float32)


def make_params(key):
    keys = jax.random.split(key, 10)
    prep = dict(
        emb_c_w=_init(keys[0], (HIDDEN, CONTENT_DIM)),
        emb_c_b=_init(keys[1], (HIDDEN, 1), 0.1),
        emb_f0_w=_init(keys[2], (HIDDEN, PITCH_DIM)),
        emb_f0_b=_init(keys[3], (HIDDEN, 1), 0.1),
        film_w1=_init(keys[4], (4 * HIDDEN, GIN)),
        film_b1=_init(keys[5], (4 * HIDDEN, 1), 0.1),
        film_w2=_init(keys[6], (2 * HIDDEN, 4 * HIDDEN)),
        film_b2=_init(keys[7], (2 * HIDDEN, 1), 0.1),
    )

    def dec(k):
        ks = jax.random.split(k, 10)
        return dict(
            pre_w=_init(ks[0], (HIDDEN, HIDDEN)),
            pre_b=_init(ks[1], (HIDDEN, 1), 0.1),
            in_w=_init(ks[2], (N_LAYERS, KSIZE, 2 * HIDDEN, HIDDEN)),
            in_b=_init(ks[3], (N_LAYERS, 2 * HIDDEN, 1), 0.1),
            cond_w=_init(ks[4], (N_LAYERS * 2 * HIDDEN, GIN)),
            cond_b=_init(ks[5], (N_LAYERS * 2 * HIDDEN, 1), 0.1),
            rs_w=_init(ks[6], (N_LAYERS, 2 * HIDDEN, HIDDEN)),   # last layer uses rows [:H]
            rs_b=_init(ks[7], (N_LAYERS, 2 * HIDDEN, 1), 0.1),
            proj_w=_init(ks[8], (OUT_DIM, HIDDEN)),
            proj_b=_init(ks[9], (OUT_DIM, 1), 0.1),
        )

    return dict(prep=prep, dec_ftr=dec(keys[8]), dec_src=dec(keys[9]))


# ------------------------------------ main --------------------------------------
if __name__ == "__main__":
    key = jax.random.PRNGKey(0)
    k1, k2, k3, kp = jax.random.split(key, 4)

    emb_content = jax.random.normal(k1, (B, CONTENT_DIM, T), jnp.float32)
    emb_pitch = jax.random.normal(k2, (B, PITCH_DIM, T), jnp.float32)
    g = jax.random.normal(k3, (B, GIN, 1), jnp.float32)
    lengths = jnp.array([T, 3 * T // 4])
    mask = (jnp.arange(T)[None, None, :] < lengths[:, None, None]).astype(jnp.float32)

    params = make_params(kp)
    packed = pack_params(params)

    forward = make_forward(_probe_roll_matches_jnp(), _prefer_decoder_split())
    y_src, y_ftr = forward(emb_content, emb_pitch, g, mask, packed)
    jax.block_until_ready((y_src, y_ftr))

    # sanity check against a pure-JAX reference (loose tol: bf16 MXU operands in the
    # kernel vs f32 XLA reference)
    r_src, r_ftr = _reference_forward(emb_content, emb_pitch, g, mask, params)
    assert y_src.shape == (B, OUT_DIM, T) and y_ftr.shape == (B, OUT_DIM, T)
    assert float(jnp.max(jnp.abs(y_src - r_src))) < 7.5e-2
    assert float(jnp.max(jnp.abs(y_ftr - r_ftr))) < 7.5e-2

    # TODO(synk): non-frame-wise pitch path (nn.Embedding + F.interpolate),
    # training-time pitch dropout, and the mixup branch are not implemented
    # (eval-mode, frame_wise_pitch=True only).
    print("KERNEL_OK")
</pallas_src>

<mosaic_0001>
module attributes {stable_mosaic.version = 11 : i64} {
  func.func @_k(%arg0: memref<8x256xf32, #tpu.memory_space<vmem>>, %arg1: memref<8x256xf32, #tpu.memory_space<vmem>>) attributes {dimension_semantics = [], scalar_prefetch = 0 : i64, scratch_operands = 0 : i64, tpu.core_type = #tpu.core_type<tc>} {
    %c0 = arith.constant 0 : index
    %c0_0 = arith.constant 0 : index
    %0 = vector.load %arg0[%c0, %c0_0] : memref<8x256xf32, #tpu.memory_space<vmem>>, vector<8x256xf32>
    %c1_i32 = arith.constant 1 : i32
    %1 = tpu.dynamic_rotate %0 by %c1_i32 dim 1 : vector<8x256xf32>, i32 -> vector<8x256xf32>
    %c0_1 = arith.constant 0 : index
    %c0_2 = arith.constant 0 : index
    %2 = vector.load %arg1[%c0_1, %c0_2] : memref<8x256xf32, #tpu.memory_space<vmem>>, vector<8x256xf32>
    tpu.vector_store %arg1[%c0_1, %c0_2], %1 {strides = array<i32>} : memref<8x256xf32, #tpu.memory_space<vmem>>, vector<8x256xf32>,
    return
  }
}

</mosaic_0001>

<bundles_post_ra>
// kernel: tpu_custom_call.1
= control target key start
LH: loop header
LB: loop body
LE: loop exit
PB: predicated region body
PF: predicated region fallthrough
CT: control target
= control target key end

     0   :  { %6 = vsyncpa [#allocation3], 0  ;;  %s127_s0 = inlined_call_operand.hbm [shape: f32[8,256], index: 0, kind: input, shape index: {}]   ;;  %s128_s1 = inlined_call_operand.hbm [shape: f32[8,256], index: 1, kind: output, shape index: {}]  }
   0x1   :  { %7 = vsyncpa [#allocation4], 0  ;;  %s13_s8 = sshll.u32 %s127_s0, 4  ;;  %s108_s9 = smov [#allocation2]   ;;  %s14_s8 = int_to_ptr.hbm [resolvable:$true] %s13_s8 }
   0x2   :  { %s15_s10 = sshll.u32 %s108_s9, 4  ;;  %s16_s10 = int_to_ptr.vmem [resolvable:$true] %s15_s10 }
   0x3   :  { %18 = dma.hbm_to_vmem [thread:$0]  %s14_s8, 256, %s16_s10, [#allocation3]  }
   0x4   :  { %104 = dma.done.wait [#allocation3], 256  }
   0x5   :  { %105 = vsyncadd [#allocation3], 4294967040  ;;  %v23_v0 = vld [vmem:[#allocation2] sm:$0xff]  ;;  %s109_s11 = smov 1   ;;  %v24_v1 = vld [vmem:[#allocation2 + $0x8] sm:$0xff]  ;;  %v29_v2 = vlaneseq  ;;  %s110_s12 = smov [#allocation5]  }
   0x6   :  { %25 = vrot.lane.b32.xlu0 %v23_v0, %s109_s11  ;;  %s41_s13 = sshll.u32 %s110_s12, 4  ;;  %s43_s15 = sshll.u32 %s128_s1, 4  ;;  %s42_s13 = int_to_ptr.vmem [resolvable:$true] %s41_s13  ;;  %s44_s15 = int_to_ptr.hbm [resolvable:$true] %s43_s15 }
   0x7   :  { %v30_v4 = vand.u32 127, %v29_v2 }
   0x9   :  { %vm31_vm0 = vcmp.lt.s32.totalorder %v30_v4, 1 }
   0xe   :  { %27 = vrot.lane.b32.xlu0 %v24_v1, %s109_s11 }
  0x78   :  { %v26_v3 = vpop.permute.xlu0 %25 }
  0x80   :  { %v28_v5 = vpop.permute.xlu0 %27 }
  0x81   :  { %v32_v6 = vsel %vm31_vm0, %v26_v3, %v28_v5  ;;  %v33_v7 = vsel %vm31_vm0, %v28_v5, %v26_v3 }
  0x82   :  { %34 = vst [vmem:[#allocation5] sm:$0xff] %v33_v7 }
  0x83   :  { %35 = vst [vmem:[#allocation5 + $0x8] sm:$0xff] %v32_v6 }
  0x84   :  { %46 = dma.vmem_to_hbm [thread:$0]  %s42_s13, 256, %s44_s15, [#allocation4]  }
  0x85   :  { %106 = dma.done.wait [#allocation4], 256  }
  0x86   :  { %107 = vsyncadd [#allocation4], 4294967040 }
  0x87   :  { %51 = vsyncpa [#allocation3], 1 }
  0x88   :  { %52 = vsyncpa [#allocation4], 1 }

</bundles_post_ra>
